<compile_context>
chip_gen: v7x
topology: tpu7x:2x2x1
jax: 0.10.0
libtpu: 0.0.40
codegen_flags: <defaults>
</compile_context>

<pallas_src>
import jax
import jax.numpy as jnp
from jax.experimental import pallas as pl
from jax.experimental.pallas import tpu as pltpu

_LANE = 128


def _round_up(x, m):
    return ((x + m - 1) // m) * m


def _stable_softplus(z):
    # softplus(z) = log(1 + exp(z)); stable form using exp/log/abs/max only.
    return jnp.log(1.0 + jnp.exp(-jnp.abs(z))) + jnp.maximum(z, 0.0)


def _mbv2_head_kernel(x_ref, eps_ref, w_ref, b_ref, out_ref, mu_ref, std_ref):
    """One K-tile of the fused MobileNetV2 head.

    Resident across the grid (constant index maps):
      x_ref   : (N, HW, 2L)  backbone features, channels-last (lane axis = 2L)
      eps_ref : (N, L)       standard-normal noise
      mu_ref  : (N, L)
      std_ref : (N, L)
    Streamed per grid step j (class tiles):
      w_ref   : (L, BK)      classifier[2].weight slab (pre-transposed)
      b_ref   : (1, BK)      classifier[2].bias slab
      out_ref : (N, BK)      logits slab
    """
    hw = x_ref.shape[1]
    latent = mu_ref.shape[-1]

    # adaptive_avg_pool2d(., (1,1)) + flatten == mean over the spatial axis.
    # Sublane reduction over HW with a compile-time reciprocal (keep 1/HW even
    # though the sublane dim is padded internally).
    pooled = jnp.sum(x_ref[...].astype(jnp.float32), axis=1) * (1.0 / hw)

    # classifier[0] Dropout(p=0.2): identity in eval mode.
    mu = pooled[:, :latent]
    std = _stable_softplus(pooled[:, latent:] - 5.0)

    # Reparameterization trick (recomputed per K tile: ~N*L VPU/EUP elements,
    # fully hidden under the weight-tile DMA stream).
    feat = mu + std * eps_ref[...].astype(jnp.float32)

    # classifier[2]: Linear(L -> K) tile on the MXU; f32 accumulation.
    logits = jnp.dot(feat.astype(w_ref.dtype), w_ref[...],
                     preferred_element_type=jnp.float32)
    logits = logits + b_ref[...].astype(jnp.float32)

    out_ref[...] = logits.astype(out_ref.dtype)
    mu_ref[...] = mu.astype(mu_ref.dtype)
    std_ref[...] = std.astype(std_ref.dtype)


def mobilenetv2_head(features, eps, w_cls, b_cls, *,
                     block_k_target=2048, weight_dtype=jnp.bfloat16):
    """CustomMobileNetV2 forward, starting from the backbone feature map.

    features : (N, C, H, W)  output of base_model.features (C >= 2*L)
    eps      : (N, L)        N(0,1) noise (== torch.randn_like(std))
    w_cls    : (L, K)        classifier[2].weight transposed to (in, out)
    b_cls    : (K,)          classifier[2].bias
    returns  : (out (N,K) f32, mu (N,L) f32, std (N,L) f32)
    """
    N, C, H, W = features.shape
    L = eps.shape[-1]
    K = w_cls.shape[-1]
    HW = H * W
    C_used = 2 * L
    assert C >= C_used, "backbone must provide at least 2*latent channels"

    # Only the first 2L channels feed the head; lay them out channels-last so
    # the lane axis is 2L (1024 for the real model) instead of HW = 49.
    # TODO(synk): in production the backbone should emit NHWC directly so this
    #             slice+transpose does not cost an extra HBM pass here.
    x = features[:, :C_used].reshape(N, C_used, HW).transpose(0, 2, 1)  # (N,HW,2L)

    # Pad K to a lane-dense multiple of 128 and pick a weight tile ~block_k_target.
    k128 = _round_up(K, _LANE)
    num_kb = max(1, k128 // block_k_target)
    block_k = _round_up(-(-k128 // num_kb), _LANE)
    k_pad = num_kb * block_k

    # Weight / bias prep (bf16 stream + zero pad to k_pad).  With fixed model
    # weights this is a one-time cost; pre-convert outside the hot path when
    # calling repeatedly.
    w_pad = jnp.pad(w_cls, ((0, 0), (0, k_pad - K))).astype(weight_dtype)
    b_pad = jnp.pad(b_cls, (0, k_pad - K)).reshape(1, k_pad)

    itemsize = lambda a: jnp.dtype(a.dtype).itemsize
    vmem_bytes = 2 * (
        N * HW * C_used * itemsize(x)          # resident feature block
        + N * L * itemsize(eps)                # resident eps
        + L * block_k * itemsize(w_pad)        # streamed weight tile
        + block_k * itemsize(b_pad)            # streamed bias tile
        + N * block_k * 4                      # streamed logits tile (f32)
        + 2 * N * L * 4                        # resident mu / std
    )
    vmem_limit = int(min(max(vmem_bytes + (2 << 20), 32 << 20), 100 << 20))

    cost = pl.CostEstimate(
        flops=2 * N * L * k_pad,
        transcendentals=2 * N * L * num_kb,    # softplus exp+log per K tile
        bytes_accessed=(x.size * itemsize(x) + eps.size * itemsize(eps)
                        + w_pad.size * itemsize(w_pad)
                        + b_pad.size * itemsize(b_pad)
                        + N * k_pad * 4 + 2 * N * L * 4),
    )

    out, mu, std = pl.pallas_call(
        _mbv2_head_kernel,
        grid=(num_kb,),
        in_specs=[
            pl.BlockSpec((N, HW, C_used), lambda j: (0, 0, 0)),   # resident
            pl.BlockSpec((N, L), lambda j: (0, 0)),               # resident
            pl.BlockSpec((L, block_k), lambda j: (0, j)),         # streamed
            pl.BlockSpec((1, block_k), lambda j: (0, j)),         # streamed
        ],
        out_specs=(
            pl.BlockSpec((N, block_k), lambda j: (0, j)),         # streamed
            pl.BlockSpec((N, L), lambda j: (0, 0)),               # resident
            pl.BlockSpec((N, L), lambda j: (0, 0)),               # resident
        ),
        out_shape=(
            jax.ShapeDtypeStruct((N, k_pad), jnp.float32),
            jax.ShapeDtypeStruct((N, L), jnp.float32),
            jax.ShapeDtypeStruct((N, L), jnp.float32),
        ),
        compiler_params=pltpu.CompilerParams(
            # mu/std output blocks are revisited across the K axis, so it must
            # be a sequential ("arbitrary") axis, not "parallel".
            dimension_semantics=("arbitrary",),
            vmem_limit_bytes=vmem_limit,
        ),
        cost_estimate=cost,
    )(x, eps, w_pad, b_pad)

    return out[:, :K], mu, std


if __name__ == "__main__":
    key = jax.random.PRNGKey(0)
    k1, k2, k3, k4 = jax.random.split(key, 4)

    # Small test shapes consistent with the module
    # (real model: C=1280, H=W=7, L=512 latent, K=8631 classes).
    N, C, H, W = 2, 64, 7, 7
    L, K = 16, 32

    feats = jax.random.uniform(k1, (N, C, H, W), dtype=jnp.float32)
    eps = jax.random.normal(k2, (N, L), dtype=jnp.float32)
    w_cls = jax.random.normal(k3, (L, K), dtype=jnp.float32) * 0.05
    b_cls = jax.random.normal(k4, (K,), dtype=jnp.float32) * 0.05

    out, mu, std = mobilenetv2_head(feats, eps, w_cls, b_cls)
    jax.block_until_ready((out, mu, std))
    assert out.shape == (N, K) and mu.shape == (N, L) and std.shape == (N, L)

    # Plain-JAX reference of the PyTorch forward (eval-mode dropout).
    pooled_r = jnp.mean(feats.reshape(N, C, H * W), axis=-1)
    mu_r = pooled_r[:, :L]
    std_r = jax.nn.softplus(pooled_r[:, L:2 * L] - 5.0)
    feat_r = mu_r + std_r * eps
    out_r = feat_r @ w_cls + b_cls

    assert jnp.allclose(mu, mu_r, atol=1e-5, rtol=1e-5)
    assert jnp.allclose(std, std_r, atol=1e-5, rtol=1e-5)
    # Logits: looser tolerance because the classifier weight/activations are
    # streamed through the MXU as bf16 (f32 accumulation).
    assert jnp.allclose(out, out_r, atol=1e-2, rtol=1e-2)

    print("KERNEL_OK")
</pallas_src>

<mosaic_0001>
module attributes {stable_mosaic.version = 11 : i64} {
  func.func @_mbv2_head_kernel(%arg0: i32, %arg1: memref<2x49x32xf32, #tpu.memory_space<vmem>>, %arg2: memref<2x16xf32, #tpu.memory_space<vmem>>, %arg3: memref<16x128xbf16, #tpu.memory_space<vmem>>, %arg4: memref<1x128xf32, #tpu.memory_space<vmem>>, %arg5: memref<2x128xf32, #tpu.memory_space<vmem>>, %arg6: memref<2x16xf32, #tpu.memory_space<vmem>>, %arg7: memref<2x16xf32, #tpu.memory_space<vmem>>) attributes {dimension_semantics = [#tpu.dimension_semantics<arbitrary>], iteration_bounds = array<i64: 1>, scalar_prefetch = 0 : i64, scratch_operands = 0 : i64, tpu.core_type = #tpu.core_type<tc>, window_params = [{pipeline_mode = #tpu.pipeline_mode<synchronous>, transform_indices = @transform_0, window_bounds = array<i64: 2, 49, 32>}, {pipeline_mode = #tpu.pipeline_mode<synchronous>, transform_indices = @transform_1, window_bounds = array<i64: 2, 16>}, {transform_indices = @transform_2, window_bounds = array<i64: 16, 128>}, {transform_indices = @transform_3, window_bounds = array<i64: 1, 128>}, {transform_indices = @transform_4, window_bounds = array<i64: 2, 128>}, {pipeline_mode = #tpu.pipeline_mode<synchronous>, transform_indices = @transform_5, window_bounds = array<i64: 2, 16>}, {pipeline_mode = #tpu.pipeline_mode<synchronous>, transform_indices = @transform_6, window_bounds = array<i64: 2, 16>}]} {
    %c0 = arith.constant 0 : index
    %c0_0 = arith.constant 0 : index
    %c0_1 = arith.constant 0 : index
    %0 = vector.load %arg1[%c0, %c0_0, %c0_1] : memref<2x49x32xf32, #tpu.memory_space<vmem>>, vector<2x49x32xf32>
    %cst = arith.constant dense<0.000000e+00> : vector<2x32xf32>
    %1 = vector.multi_reduction <add>, %0, %cst [1] : vector<2x49x32xf32> to vector<2x32xf32>
    %cst_2 = arith.constant 0.0204081628 : f32
    %2 = vector.broadcast %cst_2 : f32 to vector<2x32xf32>
    %3 = arith.mulf %1, %2 : vector<2x32xf32>
    %4 = vector.extract_strided_slice %3 {offsets = [0, 0], sizes = [2, 16], strides = [1, 1]} : vector<2x32xf32> to vector<2x16xf32>
    %5 = vector.extract_strided_slice %3 {offsets = [0, 16], sizes = [2, 16], strides = [1, 1]} : vector<2x32xf32> to vector<2x16xf32>
    %cst_3 = arith.constant 5.000000e+00 : f32
    %6 = vector.broadcast %cst_3 : f32 to vector<2x16xf32>
    %7 = arith.subf %5, %6 : vector<2x16xf32>
    %8 = math.absf %7 : vector<2x16xf32>
    %cst_4 = arith.constant 0.000000e+00 : f32
    %9 = vector.broadcast %cst_4 : f32 to vector<2x16xf32>
    %10 = arith.subf %9, %8 : vector<2x16xf32>
    %11 = math.exp %10 : vector<2x16xf32>
    %cst_5 = arith.constant 1.000000e+00 : f32
    %12 = vector.broadcast %cst_5 : f32 to vector<2x16xf32>
    %13 = arith.addf %12, %11 : vector<2x16xf32>
    %14 = math.log %13 : vector<2x16xf32>
    %cst_6 = arith.constant 0.000000e+00 : f32
    %15 = vector.broadcast %cst_6 : f32 to vector<2x16xf32>
    %16 = arith.maximumf %7, %15 : vector<2x16xf32>
    %17 = arith.addf %14, %16 : vector<2x16xf32>
    %c0_7 = arith.constant 0 : index
    %c0_8 = arith.constant 0 : index
    %18 = vector.load %arg2[%c0_7, %c0_8] : memref<2x16xf32, #tpu.memory_space<vmem>>, vector<2x16xf32>
    %19 = arith.mulf %17, %18 : vector<2x16xf32>
    %20 = arith.addf %4, %19 : vector<2x16xf32>
    %21 = arith.truncf %20 : vector<2x16xf32> to vector<2x16xbf16>
    %c0_9 = arith.constant 0 : index
    %c0_10 = arith.constant 0 : index
    %22 = vector.load %arg3[%c0_9, %c0_10] : memref<16x128xbf16, #tpu.memory_space<vmem>>, vector<16x128xbf16>
    %cst_11 = arith.constant dense<0.000000e+00> : vector<2x128xf32>
    %23 = tpu.matmul %21, %22, %cst_11 {dimension_numbers = #tpu.dot_dimension_numbers<[1], [0], [0], [1], [0, 0, 1, 1], [], []>} : vector<2x16xbf16>, vector<16x128xbf16>, vector<2x128xf32> -> vector<2x128xf32>
    %c0_12 = arith.constant 0 : index
    %c0_13 = arith.constant 0 : index
    %24 = vector.load %arg4[%c0_12, %c0_13] : memref<1x128xf32, #tpu.memory_space<vmem>>, vector<1x128xf32>
    %25 = vector.broadcast %24 : vector<1x128xf32> to vector<2x128xf32>
    %26 = arith.addf %23, %25 : vector<2x128xf32>
    %c0_14 = arith.constant 0 : index
    %c0_15 = arith.constant 0 : index
    %27 = vector.load %arg5[%c0_14, %c0_15] : memref<2x128xf32, #tpu.memory_space<vmem>>, vector<2x128xf32>
    tpu.vector_store %arg5[%c0_14, %c0_15], %26 {strides = array<i32>} : memref<2x128xf32, #tpu.memory_space<vmem>>, vector<2x128xf32>,
    %c0_16 = arith.constant 0 : index
    %c0_17 = arith.constant 0 : index
    %28 = vector.load %arg6[%c0_16, %c0_17] : memref<2x16xf32, #tpu.memory_space<vmem>>, vector<2x16xf32>
    tpu.vector_store %arg6[%c0_16, %c0_17], %4 {strides = array<i32>} : memref<2x16xf32, #tpu.memory_space<vmem>>, vector<2x16xf32>,
    %c0_18 = arith.constant 0 : index
    %c0_19 = arith.constant 0 : index
    %29 = vector.load %arg7[%c0_18, %c0_19] : memref<2x16xf32, #tpu.memory_space<vmem>>, vector<2x16xf32>
    tpu.vector_store %arg7[%c0_18, %c0_19], %17 {strides = array<i32>} : memref<2x16xf32, #tpu.memory_space<vmem>>, vector<2x16xf32>,
    return
  }
  func.func @transform_0(%arg0: i32) -> (i32, i32, i32) {
    %c0_i32 = arith.constant 0 : i32
    %c0_i32_0 = arith.constant 0 : i32
    %c0_i32_1 = arith.constant 0 : i32
    %c0_i32_2 = arith.constant 0 : i32
    return %c0_i32, %c0_i32_0, %c0_i32_1 : i32, i32, i32
  }
  func.func @transform_1(%arg0: i32) -> (i32, i32) {
    %c0_i32 = arith.constant 0 : i32
    %c0_i32_0 = arith.constant 0 : i32
    %c0_i32_1 = arith.constant 0 : i32
    return %c0_i32, %c0_i32_0 : i32, i32
  }
  func.func @transform_2(%arg0: i32) -> (i32, i32) {
    %c0_i32 = arith.constant 0 : i32
    %c0_i32_0 = arith.constant 0 : i32
    return %c0_i32, %arg0 : i32, i32
  }
  func.func @transform_3(%arg0: i32) -> (i32, i32) {
    %c0_i32 = arith.constant 0 : i32
    %c0_i32_0 = arith.constant 0 : i32
    return %c0_i32, %arg0 : i32, i32
  }
  func.func @transform_4(%arg0: i32) -> (i32, i32) {
    %c0_i32 = arith.constant 0 : i32
    %c0_i32_0 = arith.constant 0 : i32
    return %c0_i32, %arg0 : i32, i32
  }
  func.func @transform_5(%arg0: i32) -> (i32, i32) {
    %c0_i32 = arith.constant 0 : i32
    %c0_i32_0 = arith.constant 0 : i32
    %c0_i32_1 = arith.constant 0 : i32
    return %c0_i32, %c0_i32_0 : i32, i32
  }
  func.func @transform_6(%arg0: i32) -> (i32, i32) {
    %c0_i32 = arith.constant 0 : i32
    %c0_i32_0 = arith.constant 0 : i32
    %c0_i32_1 = arith.constant 0 : i32
    return %c0_i32, %c0_i32_0 : i32, i32
  }
}

</mosaic_0001>

<bundles_post_ra>
// kernel: tpu_custom_call.1
= control target key start
LH: loop header
LB: loop body
LE: loop exit
PB: predicated region body
PF: predicated region fallthrough
CT: control target
= control target key end

     0   :  { %12 = vsyncpa [#allocation3], 0  ;;  %s343_s23 = smov 16   ;;  %vm37_vm0 = vcmask 261120   ;;  %s487_s0 = inlined_call_operand.vmem [shape: f32[2,49,32], index: 0, kind: input, shape index: {}]   ;;  %s488_s1 = inlined_call_operand.vmem [shape: f32[2,16], index: 1, kind: input, shape index: {}]   ;;  %s489_s2 = inlined_call_operand.vmem [shape: bf16[16,128], index: 2, kind: input, shape index: {}]   ;;  %s490_s3 = inlined_call_operand.vmem [shape: f32[1,128], index: 3, kind: input, shape index: {}]   ;;  %s491_s4 = inlined_call_operand.hbm [shape: f32[2,128], index: 4, kind: output, shape index: {0}]   ;;  %s492_s5 = inlined_call_operand.hbm [shape: f32[2,16], index: 5, kind: output, shape index: {1}]   ;;  %s493_s6 = inlined_call_operand.hbm [shape: f32[2,16], index: 6, kind: output, shape index: {2}]  }
   0x1   :  { %v99_v0 = vld [vmem:[%s488_s1] sm:$0x3]  ;;  %v30_v2 = vld [vmem:[%s487_s0 + $0x38] sm:$0xff] }
   0x2   :  { %v101_v1 = vrot.slane %v99_v0, 1  ;;  %v31_v3 = vld [vmem:[%s487_s0 + $0x40] sm:$0xff] }
   0x4   :  { %104 = vrot.lane.b32.xlu0 %v101_v1, %s343_s23 }
   0x8   :  { %102 = vrot.lane.b32.xlu0 %v99_v0, %s343_s23 }
   0x9   :  { %13 = vsyncpa [#allocation5], 0  ;;  %v58_v4 = vsel %vm37_vm0, %v30_v2, 0.0  ;;  %v59_v5 = vsel %vm37_vm0, %v31_v3, 0.0  ;;  %v32_v6 = vld [vmem:[%s487_s0 + $0x48] sm:$0xff]  ;;  %v23_v7 = vld [vmem:[%s487_s0] sm:$0xff] }
   0xa   :  { %v24_v8 = vld [vmem:[%s487_s0 + $0x8] sm:$0xff]  ;;  %v60_v9 = vadd.f32 %v59_v5, %v58_v4  ;;  %v61_v10 = vsel %vm37_vm0, %v32_v6, 0.0  ;;  %v38_v11 = vsel %vm37_vm0, %v23_v7, 0.0  ;;  %v33_v13 = vld [vmem:[%s487_s0 + $0x50] sm:$0xff]  ;;  %v34_v19 = vld [vmem:[%s487_s0 + $0x58] sm:$0xff]  ;;  %vm49_vm1 = vcmask 253952  }
   0xb   :  { %v39_v12 = vsel %vm37_vm0, %v24_v8, 0.0  ;;  %v25_v14 = vld [vmem:[%s487_s0 + $0x10] sm:$0xff]  ;;  %v63_v17 = vsel %vm37_vm0, %v33_v13, 0.0  ;;  %v26_v20 = vld [vmem:[%s487_s0 + $0x18] sm:$0xff]  ;;  %v65_v23 = vsel %vm37_vm0, %v34_v19, 0.0  ;;  %v35_v25 = vld [vmem:[%s487_s0 + $0x60] sm:$0xff] }
   0xc   :  { %v62_v15 = vadd.f32 %v61_v10, %v60_v9  ;;  %v40_v16 = vadd.f32 %v39_v12, %v38_v11  ;;  %v41_v18 = vsel %vm37_vm0, %v25_v14, 0.0  ;;  %v43_v24 = vsel %vm37_vm0, %v26_v20, 0.0  ;;  %v27_v26 = vld [vmem:[%s487_s0 + $0x20] sm:$0xff]  ;;  %v36_v31 = vld [vmem:[%s487_s0 + $0x68] sm:$0x1]  ;;  %s346_s28 = smov 112  }
   0xd   :  { %v67_v29 = vsel %vm37_vm0, %v35_v25, 0.0  ;;  %v45_v30 = vsel %vm37_vm0, %v27_v26, 0.0  ;;  %v28_v32 = vld [vmem:[%s487_s0 + $0x28] sm:$0xff]  ;;  %v69_v35 = vsel %vm49_vm1, %v36_v31, 0.0  ;;  %v29_v37 = vld [vmem:[%s487_s0 + $0x30] sm:$0x1] }
   0xe   :  { %v64_v21 = vadd.f32 %v63_v17, %v62_v15  ;;  %v42_v22 = vadd.f32 %v41_v18, %v40_v16  ;;  %v47_v36 = vsel %vm37_vm0, %v28_v32, 0.0  ;;  %v50_v40 = vsel %vm49_vm1, %v29_v37, 0.0  ;;  %v264_v11 = vld [vmem:[%s489_s2] sm:$0xff]   ;;  %s347_s2 = smov [#allocation4]  }
   0xf   :  { %v344_v12 = vmov 0.0   ;;  %vm136_vm2 = vcmask 1041409   ;;  %vm345_vm3 = vmmov 0   ;;  %vm145_vm4 = vcmask 130048   ;;  %s219_s1 = sshll.u32 %s347_s2, 4  ;;  %s220_s1 = int_to_ptr.vmem [resolvable:$true] %s219_s1 }
  0x10   :  { %v66_v27 = vadd.f32 %v65_v23, %v64_v21  ;;  %v44_v28 = vadd.f32 %v43_v24, %v42_v22  ;;  %251 = vmatprep.subr.bf16.mxu0 %v344_v12  ;;  %253 = vmatprep.mubr.msk.bf16.mxu0 %vm345_vm3, %v344_v12  ;;  %vm194_vm5 = vcmask 123904   ;;  %s273_s29 = scalar_lea.vmem %s220_s1, 32  ;;  %p278_p1 = scmp.lt.s32.totalorder %s220_s1, %s220_s1 }
  0x11   :  { %252 = vmatpush3.bf16.msra.mxu0 %v264_v11  ;;  %p274_p0 = scmp.ne.s32.totalorder %s220_s1, %s273_s29  ;;  %p279_p2 = scmp.lt.s32.totalorder %s273_s29, %s273_s29 }
  0x12   :  { %v68_v33 = vadd.f32 %v67_v29, %v66_v27  ;;  %v46_v34 = vadd.f32 %v45_v30, %v44_v28 }
  0x13   :  { %p280_p3 = por %p279_p2, %p278_p1 }
  0x14   :  { %v70_v38 = vadd.f32 %v69_v35, %v68_v33  ;;  %v48_v39 = vadd.f32 %v47_v36, %v46_v34 }
  0x15   :  { %p281_p4 = pnand %p280_p3, %p274_p0 }
  0x16   :  { %v71_v41 = vrot.slane %v70_v38, 4  ;;  %v51_v42 = vadd.f32 %v50_v40, %v48_v39 }
  0x18   :  { %v72_v43 = vadd.f32 %v71_v41, %v70_v38  ;;  %v52_v44 = vrot.slane %v51_v42, 4 }
  0x1a   :  { %v73_v45 = vrot.slane %v72_v43, 2  ;;  %v53_v46 = vadd.f32 %v52_v44, %v51_v42 }
  0x1c   :  { %v74_v47 = vadd.f32 %v73_v45, %v72_v43  ;;  %v54_v48 = vrot.slane %v53_v46, 2 }
  0x1e   :  { %v75_v49 = vrot.slane %v74_v47, 1  ;;  %v55_v50 = vadd.f32 %v54_v48, %v53_v46 }
  0x20   :  { %v76_v51 = vadd.f32 %v75_v49, %v74_v47  ;;  %v56_v52 = vrot.slane %v55_v50, 1 }
  0x22   :  { %v78_v53 = vmul.f32 0.020408163, %v76_v51  ;;  %v57_v54 = vadd.f32 %v56_v52, %v55_v50 }
  0x24   :  { %v245_v55 = vadd.f32 -5.0, %v78_v53  ;;  %v77_v56 = vmul.f32 0.020408163, %v57_v54 }
  0x26   :  { %v82_v57 = vand.u32 2147483647, %v245_v55  ;;  %v244_v58 = vadd.f32 -5.0, %v77_v56  ;;  %v96_v6 = vmax.f32 %v245_v55, 0.0  ;;  %v192_v30 = vsel %vm136_vm2, %v78_v53, %v77_v56 }
  0x27   :  { %195 = vst.msk [vmem:[#allocation4] sm:$0x3] %vm194_vm5, %v192_v30 }
  0x28   :  { %v84_v59 = vsub.f32 0.0, %v82_v57  ;;  %v81_v60 = vand.u32 2147483647, %v244_v58  ;;  %v95_v10 = vmax.f32 %v244_v58, 0.0 }
  0x2a   :  { %v87_v61 = vmul.f32 1.442695, %v84_v59  ;;  %v83_v62 = vsub.f32 0.0, %v81_v60 }
  0x2c   :  { %265 = vpow2.f32 %v87_v61  ;;  %v85_v63 = vmul.f32 1.442695, %v83_v62 }
  0x2e   :  { %267 = vpow2.f32 %v85_v63 }
  0x36   :  { %v266_v0 = vpop.eup %265 }
  0x37   :  { %v90_v1 = vadd.f32 1.0, %v266_v0 }
  0x38   :  { %v268_v2 = vpop.eup %267 }
  0x39   :  { %269 = vlog2.f32 %v90_v1  ;;  %v89_v3 = vadd.f32 1.0, %v268_v2 }
  0x3b   :  { %271 = vlog2.f32 %v89_v3 }
  0x43   :  { %v270_v4 = vpop.eup %269 }
  0x44   :  { %v94_v5 = vmul.f32 0.6931472, %v270_v4 }
  0x45   :  { %v272_v7 = vpop.eup %271 }
  0x46   :  { %v98_v8 = vadd.f32 %v96_v6, %v94_v5  ;;  %v92_v9 = vmul.f32 0.6931472, %v272_v7 }
  0x48   :  { %v97_v15 = vadd.f32 %v95_v10, %v92_v9 }
  0x4a   :  { %v198_v16 = vsel %vm136_vm2, %v98_v8, %v97_v15 }
  0x4b   :  { %199 = vrot.lane.b32.xlu0 %v198_v16, %s346_s28 }
  0x76   :  { %v105_v13 = vpop.permute.xlu0 %104 }
  0x77   :  { %v109_v14 = vmul.f32 %v105_v13, %v98_v8 }
  0x79   :  { %114 = vrot.lane.b32.xlu1 %v109_v14, %s346_s28 }
  0x7a   :  { %v103_v17 = vpop.permute.xlu0 %102 }
  0x7b   :  { %v108_v18 = vmul.f32 %v103_v17, %v97_v15 }
  0x7d   :  { %112 = vrot.lane.b32.xlu1 %v108_v18, %s346_s28 }
  0xbd   :  { %v200_v31 = vpop.permute.xlu0 %199 }
  0xbe   :  { %202 = vst.msk [vmem:[#allocation6] sm:$0x3] %vm194_vm5, %v200_v31 }
  0xeb   :  { %v115_v19 = vpop.permute.xlu1 %114 }
  0xec   :  { %v119_v20 = vadd.f32 %v115_v19, %v78_v53 }
  0xee   :  { %v121_v21 = vpack.c.bf16 %v119_v20, %v119_v20 }
  0xef   :  { %v113_v22 = vpop.permute.xlu1 %112 }
  0xf0   :  { %v134_v23 = vunpack.c.l.b16 %v121_v21  ;;  %v118_v24 = vadd.f32 %v113_v22, %v77_v56 }
  0xf2   :  { %v120_v25 = vpack.c.bf16 %v118_v24, %v118_v24  ;;  %v135_v26 = vrot.slane %v134_v23, 7 }
  0xf4   :  { %v133_v27 = vunpack.c.l.b16 %v120_v25 }
  0xf6   :  { %v137_v28 = vsel %vm136_vm2, %v135_v26, %v133_v27 }
  0xf7   :  { %v138_v29 = vpack.c.b16 %v137_v28, %v137_v28 }
  0xf9   :  { %254 = vmatmul.mubr.msk.bf16.vlgmr.msra.gmra.mrb[0].mxu0 %vm145_vm4, %v138_v29 }
  0xfa   :  { %284 = shalt.err (!%p281_p4)
}
  0xfb   :  { %s285_s8 = scalar_lea.hbm %s492_s5, 32 }
  0xfc   :  { %p286_p5 = scmp.ne.s32.totalorder %s492_s5, %s285_s8  ;;  %p289_p6 = scmp.lt.u32.totalorder %s285_s8, %s492_s5 }
  0xfe   :  { %p291_p7 = pnand %p289_p6, %p286_p5 }
 0x100   :  { %294 = shalt.err (!%p291_p7)
}
 0x101   :  { %222 = dma.vmem_to_hbm [thread:$0]  %s220_s1, 32, %s492_s5, [#allocation5]  }
 0x102   :  { %s348_s15 = smov [#allocation6]  }
 0x103   :  { %s229_s16 = sshll.u32 %s348_s15, 4  ;;  %s230_s16 = int_to_ptr.vmem [resolvable:$true] %s229_s16 }
 0x104   :  { %s295_s17 = scalar_lea.vmem %s230_s16, 32  ;;  %p300_p9 = scmp.lt.s32.totalorder %s230_s16, %s230_s16 }
 0x105   :  { %p296_p8 = scmp.ne.s32.totalorder %s230_s16, %s295_s17  ;;  %p301_p10 = scmp.lt.s32.totalorder %s295_s17, %s295_s17 }
 0x107   :  { %p302_p11 = por %p301_p10, %p300_p9 }
 0x109   :  { %p303_p12 = pnand %p302_p11, %p296_p8 }
 0x10b   :  { %306 = shalt.err (!%p303_p12)
}
 0x10c   :  { %s307_s20 = scalar_lea.hbm %s493_s6, 32 }
 0x10d   :  { %p308_p13 = scmp.ne.s32.totalorder %s493_s6, %s307_s20  ;;  %p311_p0 = scmp.lt.u32.totalorder %s307_s20, %s493_s6 }
 0x10f   :  { %p313_p1 = pnand %p311_p0, %p308_p13 }
 0x111   :  { %316 = shalt.err (!%p313_p1)
}
 0x112   :  { %232 = dma.vmem_to_hbm [thread:$0]  %s230_s16, 32, %s493_s6, [#allocation5]   ;;  %v246_v32 = vld [vmem:[%s490_s3] ss:$0 sm:$0xff] }
 0x113   :  { %s349_s27 = smov [#allocation2]  }
 0x114   :  { %s209_s28 = sshll.u32 %s349_s27, 4  ;;  %s210_s28 = int_to_ptr.vmem [resolvable:$true] %s209_s28 }
 0x115   :  { %s317_s2 = scalar_lea.vmem %s210_s28, 32  ;;  %p322_p3 = scmp.lt.s32.totalorder %s210_s28, %s210_s28 }
 0x116   :  { %p318_p2 = scmp.ne.s32.totalorder %s210_s28, %s317_s2  ;;  %p323_p4 = scmp.lt.s32.totalorder %s317_s2, %s317_s2 }
 0x118   :  { %p324_p5 = por %p323_p4, %p322_p3 }
 0x11a   :  { %p325_p6 = pnand %p324_p5, %p318_p2 }
 0x1cc   :  { %v183_v33 = vpop.f32.mrb[0].mxu0 }
 0x1cd   :  { %v184_v34 = vadd.f32 %v246_v32, %v183_v33  ;;  %v255_v35 = vpop.f32.mrb[1].mxu0 }
 0x1ce   :  { %v186_v36 = vpop.f32.mrb[2].mxu0 }
 0x1cf   :  { %189 = vst [vmem:[#allocation2] sm:$0x3] %v184_v34  ;;  %v256_v37 = vpop.f32.mrb[3].mxu0 }
 0x1d0   :  { %328 = shalt.err (!%p325_p6)
}
 0x1d1   :  { %s329_s3 = scalar_lea.hbm %s491_s4, 32 }
 0x1d2   :  { %p330_p7 = scmp.ne.s32.totalorder %s491_s4, %s329_s3  ;;  %p333_p8 = scmp.lt.u32.totalorder %s329_s3, %s491_s4 }
 0x1d4   :  { %p335_p9 = pnand %p333_p8, %p330_p7 }
 0x1d6   :  { %338 = shalt.err (!%p335_p9)
}
 0x1d7   :  { %212 = dma.vmem_to_hbm [thread:$0]  %s210_s28, 32, %s491_s4, [#allocation3]  }
 0x1d8   :  { %339 = dma.done.wait [#allocation3], 32  }
 0x1d9   :  { %340 = vsyncadd [#allocation3], 4294967264 }
 0x1da   :  { %341 = dma.done.wait [#allocation5], 64  }
 0x1db   :  { %342 = vsyncadd [#allocation5], 4294967232 }
 0x1dc   :  { %242 = vsyncpa [#allocation3], 1 }
 0x1dd   :  { %243 = vsyncpa [#allocation5], 1 }

</bundles_post_ra>
